<compile_context>
chip_gen: v7x
topology: tpu7x:2x2x1
jax: 0.10.0
libtpu: 0.0.40
codegen_flags: <defaults>
</compile_context>

<pallas_src>
import math
import jax
import jax.numpy as jnp
from jax.experimental import pallas as pl
from jax.experimental.pallas import tpu as pltpu

SQRT2 = math.sqrt(2.0)
INV_SQRT2 = 1.0 / math.sqrt(2.0)
LRELU_SLOPE = 0.2
_BLUR_1D = (1.0 / 8.0, 3.0 / 8.0, 3.0 / 8.0, 1.0 / 8.0)   # separable [1,3,3,1]/8

ROW_TILE = 1024            # review: keep 1024-row matmul tiles on every generation


def _cdiv(a, b):
    return (a + b - 1) // b


def _round_up(n, m):
    return _cdiv(n, m) * m


def _vmem_limit_bytes():
    """Generation-aware VMEM request (v7x has only 64 MiB physical/TC)."""
    cap = 128 * 1024 * 1024
    try:
        cap = int(getattr(pltpu.get_tpu_info(), "vmem_capacity_bytes", cap))
    except Exception:
        pass
    return int(min(cap * 3 // 4, 100 * 1024 * 1024))


VMEM_LIMIT = _vmem_limit_bytes()


# ----------------------------------------------------------------------------
# pipeline_mode=pl.Buffered(n) support probe (review: Buffered(1) weights,
# Buffered(3) streaming rows).  If the running Pallas rejects it we silently
# fall back to default double buffering.
# ----------------------------------------------------------------------------
_BUFFERED_OK = None


def _buffered_ok():
    global _BUFFERED_OK
    if _BUFFERED_OK is None:
        try:
            def k(a_ref, b_ref, o_ref):
                o_ref[...] = a_ref[...] + b_ref[...]

            xa = jnp.zeros((32, 128), jnp.float32)
            xb = jnp.ones((8, 128), jnp.float32)
            r = pl.pallas_call(
                k,
                out_shape=jax.ShapeDtypeStruct((32, 128), jnp.float32),
                grid=(4,),
                in_specs=[pl.BlockSpec((8, 128), lambda i: (i, 0),
                                       pipeline_mode=pl.Buffered(3)),
                          pl.BlockSpec((8, 128), lambda i: (0, 0),
                                       pipeline_mode=pl.Buffered(1))],
                out_specs=pl.BlockSpec((8, 128), lambda i: (i, 0)),
            )(xa, xb)
            jax.block_until_ready(r)
            _BUFFERED_OK = True
        except Exception:
            _BUFFERED_OK = False
    return _BUFFERED_OK


def _spec(block_shape, index_map, bufs=None):
    if bufs is not None and _buffered_ok():
        return pl.BlockSpec(block_shape, index_map, pipeline_mode=pl.Buffered(bufs))
    return pl.BlockSpec(block_shape, index_map)


def _blur_compute_dtype():
    # review: bf16 blur math on v6e/v7x (2x VPU, half the vregs); f32 on v5e.
    try:
        kind = jax.devices()[0].device_kind.lower()
    except Exception:
        return jnp.float32
    return jnp.bfloat16 if ("v6" in kind or "v7" in kind) else jnp.float32


# ----------------------------------------------------------------------------
# Gridless helper for the small tail kernels (stddev feature, fused linears).
# ----------------------------------------------------------------------------
def _pcall(kernel, out_shape, out_dtype, *inputs):
    return pl.pallas_call(
        kernel,
        out_shape=jax.ShapeDtypeStruct(out_shape, out_dtype),
        in_specs=[pl.BlockSpec(memory_space=pltpu.MemorySpace.VMEM)] * len(inputs),
        out_specs=pl.BlockSpec(memory_space=pltpu.MemorySpace.VMEM),
        compiler_params=pltpu.CompilerParams(vmem_limit_bytes=VMEM_LIMIT),
    )(*inputs)


# ----------------------------------------------------------------------------
# Row-tiled matmul conv (1x1 convs + the stride-2 3x3 conv via im2col)
# with fused bias / FusedLeakyReLU / ResBlock-residual epilogues.
# ----------------------------------------------------------------------------
def _make_matmul_kernel(activate, has_bias, has_residual):
    def kernel(*refs):
        it = iter(refs)
        x_ref = next(it)                       # (Tr, Kd)   bf16
        w_ref = next(it)                       # (Kd, Cout) bf16 (resident)
        b_ref = next(it) if has_bias else None
        r_ref = next(it) if has_residual else None
        o_ref = next(it)
        acc = jnp.dot(x_ref[...], w_ref[...], preferred_element_type=jnp.float32)
        if has_bias:
            acc = acc + b_ref[...]
        if activate:                           # fused_leaky_relu
            acc = jnp.where(acc >= 0.0, acc, LRELU_SLOPE * acc) * SQRT2
        if has_residual:                       # (out + skip) / sqrt(2)
            acc = (acc + r_ref[...].astype(jnp.float32)) * INV_SQRT2
        o_ref[...] = acc.astype(o_ref.dtype)
    return kernel


def _conv_matmul(x_rows, w_mat, bias, residual, activate, out_dtype):
    R, Kd = x_rows.shape
    Cout = w_mat.shape[1]
    Tr = min(ROW_TILE, _round_up(R, 8))
    # review: triple-buffer the streaming rows when the block is small enough.
    x_bufs = 3 if Tr * Kd * 2 <= (4 << 20) else None
    in_specs = [_spec((Tr, Kd), lambda i: (i, 0), bufs=x_bufs),
                _spec((Kd, Cout), lambda i: (0, 0), bufs=1)]   # resident weights
    inputs = [x_rows, w_mat]
    if bias is not None:
        in_specs.append(_spec((1, Cout), lambda i: (0, 0), bufs=1))
        inputs.append(bias.reshape(1, Cout).astype(jnp.float32))
    if residual is not None:
        in_specs.append(pl.BlockSpec((Tr, Cout), lambda i: (i, 0)))
        inputs.append(residual)
    # Partial edge blocks: garbage rows are row-independent and masked on store.
    return pl.pallas_call(
        _make_matmul_kernel(activate, bias is not None, residual is not None),
        out_shape=jax.ShapeDtypeStruct((R, Cout), out_dtype),
        grid=(_cdiv(R, Tr),),
        in_specs=in_specs,
        out_specs=pl.BlockSpec((Tr, Cout), lambda i: (i, 0)),
        compiler_params=pltpu.CompilerParams(
            dimension_semantics=("parallel",),     # shard rows across TCs (v7x)
            vmem_limit_bytes=VMEM_LIMIT),
    )(*inputs)


def conv1x1(x, w_scaled, bias, *, activate, residual=None, out_dtype=jnp.bfloat16):
    B, H, W, C = x.shape
    Cout = w_scaled.shape[-1]
    w_mat = w_scaled.reshape(C, Cout).astype(jnp.bfloat16)
    r = None
    if residual is not None:
        r = residual.reshape(B * H * W, Cout).astype(jnp.bfloat16)
    out = _conv_matmul(x.reshape(B * H * W, C).astype(jnp.bfloat16),
                       w_mat, bias, r, activate, out_dtype)
    return out.reshape(B, H, W, Cout)


def _im2col(x, K, stride, padding):
    B, H, W, C = x.shape
    if padding > 0:
        x = jnp.pad(x, ((0, 0), (padding, padding), (padding, padding), (0, 0)))
        H += 2 * padding
        W += 2 * padding
    Ho = (H - K) // stride + 1
    Wo = (W - K) // stride + 1
    cols = []
    for kh in range(K):
        for kw in range(K):
            cols.append(x[:, kh:kh + (Ho - 1) * stride + 1:stride,
                            kw:kw + (Wo - 1) * stride + 1:stride, :])
    x_col = jnp.concatenate(cols, axis=-1)            # (B, Ho, Wo, K*K*C)
    return x_col.reshape(B * Ho * Wo, K * K * C), Ho, Wo


def conv_im2col(x, w_scaled, bias, *, K, stride, padding, activate,
                residual=None, out_dtype=jnp.bfloat16):
    B = x.shape[0]
    Cin = x.shape[-1]
    Cout = w_scaled.shape[-1]
    x_rows, Ho, Wo = _im2col(x.astype(jnp.bfloat16), K, stride, padding)
    w_mat = w_scaled.reshape(K * K * Cin, Cout).astype(jnp.bfloat16)
    r = None
    if residual is not None:
        r = residual.reshape(B * Ho * Wo, Cout).astype(jnp.bfloat16)
    out = _conv_matmul(x_rows, w_mat, bias, r, activate, out_dtype)
    return out.reshape(B, Ho, Wo, Cout)


# ----------------------------------------------------------------------------
# 3x3 stride-1 conv with IN-KERNEL tap accumulation (no HBM im2col).
# Two views of the same padded activation supply the Th-row block plus a
# 2-row halo; the 9 taps are accumulated in f32 with fused bias + leaky-relu.
# ----------------------------------------------------------------------------
def _make_conv3x3_kernel(Th, W, activate):
    def kernel(x1_ref, x2_ref, w_ref, b_ref, o_ref):
        top = x1_ref[0]                                  # (Th, Wp, C) bf16
        halo = x2_ref[0][:2]                             # (2,  Wp, C) bf16
        strip = jnp.concatenate([top, halo], axis=0)     # (Th+2, Wp, C)
        C = strip.shape[-1]
        Cout = o_ref.shape[-1]
        acc = jnp.zeros((Th * W, Cout), jnp.float32)
        for kh in range(3):
            for kw in range(3):
                a = strip[kh:kh + Th, kw:kw + W, :].reshape(Th * W, C)
                acc = acc + jnp.dot(a, w_ref[kh * 3 + kw],
                                    preferred_element_type=jnp.float32)
        acc = acc + b_ref[...]
        if activate:
            acc = jnp.where(acc >= 0.0, acc, LRELU_SLOPE * acc) * SQRT2
        o_ref[...] = acc.reshape(1, Th, W, Cout).astype(o_ref.dtype)
    return kernel


def conv3x3_s1(x, w_scaled, bias, *, activate=True, out_dtype=jnp.bfloat16):
    B, H, W, C = x.shape
    Cout = w_scaled.shape[-1]
    # TODO(synk): the 1-pixel padding is still a wrapper-side jnp.pad copy.
    x_pad = jnp.pad(x.astype(jnp.bfloat16), ((0, 0), (1, 1), (1, 1), (0, 0)))
    Hp, Wp = H + 2, W + 2

    # Pick Th (even): ~2 MiB bf16 input strip and ~4 MiB f32 accumulator.
    th_in = (2 << 20) // max(1, Wp * C * 2)
    th_acc = (4 << 20) // max(1, W * Cout * 4)
    Th = max(2, (min(th_in, th_acc) // 2) * 2)
    Th = min(Th, _round_up(H, 2))
    n_hb = _cdiv(H, Th)

    w9 = w_scaled.reshape(9, C, Cout).astype(jnp.bfloat16)
    b = bias.reshape(1, Cout).astype(jnp.float32)

    half_blocks = _cdiv(Hp, 2)

    def x2_map(bb, r):
        # 2-row halo block starting at padded row (r+1)*Th, clamped in-range.
        return (bb, jnp.minimum((r + 1) * (Th // 2), half_blocks - 1), 0, 0)

    return pl.pallas_call(
        _make_conv3x3_kernel(Th, W, activate),
        out_shape=jax.ShapeDtypeStruct((B, H, W, Cout), out_dtype),
        grid=(B, n_hb),
        in_specs=[_spec((1, Th, Wp, C), lambda bb, r: (bb, r, 0, 0), bufs=3),
                  _spec((1, 2, Wp, C), x2_map),
                  _spec((9, C, Cout), lambda bb, r: (0, 0, 0), bufs=1),
                  _spec((1, Cout), lambda bb, r: (0, 0), bufs=1)],
        out_specs=pl.BlockSpec((1, Th, W, Cout), lambda bb, r: (bb, r, 0, 0)),
        compiler_params=pltpu.CompilerParams(
            dimension_semantics=("parallel", "parallel"),
            vmem_limit_bytes=VMEM_LIMIT),
    )(x_pad, x_pad, w9, b)


# ----------------------------------------------------------------------------
# Blur (upfirdn2d with [1,3,3,1], up=down=1) -- separable 4+4 tap VPU kernel,
# row-tiled with a 3-row halo (two views), bf16 math on v6e/v7x.
# ----------------------------------------------------------------------------
def _make_blur_kernel(Th, Wo, compute_dtype):
    def kernel(x1_ref, x2_ref, o_ref):
        top = x1_ref[0].astype(compute_dtype)            # (Th, Wp, C)
        halo = x2_ref[0][:3].astype(compute_dtype)       # (3,  Wp, C)
        strip = jnp.concatenate([top, halo], axis=0)     # (Th+3, Wp, C)
        v = _BLUR_1D[0] * strip[0:Th]                    # vertical pass
        for k in range(1, 4):
            v = v + _BLUR_1D[k] * strip[k:k + Th]
        o = _BLUR_1D[0] * v[:, 0:Wo]                     # horizontal pass
        for k in range(1, 4):
            o = o + _BLUR_1D[k] * v[:, k:k + Wo]
        o_ref[...] = o[None].astype(o_ref.dtype)
    return kernel


def blur(x, pad0, pad1):
    B, H, W, C = x.shape
    # TODO(synk): padding is still a wrapper-side jnp.pad copy (in-kernel pad
    # would need masked halo reads on the unpadded input).
    xp = jnp.pad(x.astype(jnp.bfloat16),
                 ((0, 0), (pad0, pad1), (pad0, pad1), (0, 0)))
    Hp, Wp = H + pad0 + pad1, W + pad0 + pad1
    Ho, Wo = Hp - 3, Wp - 3

    row_bytes = Wp * C * 2
    Th = max(4, (((2 << 20) // max(1, row_bytes)) // 4) * 4)   # multiple of 4
    Th = min(Th, _round_up(Ho, 4))
    n_hb = _cdiv(Ho, Th)
    quad_blocks = _cdiv(Hp, 4)

    def x2_map(b, r):
        return (b, jnp.minimum((r + 1) * (Th // 4), quad_blocks - 1), 0, 0)

    return pl.pallas_call(
        _make_blur_kernel(Th, Wo, _blur_compute_dtype()),
        out_shape=jax.ShapeDtypeStruct((B, Ho, Wo, C), jnp.bfloat16),
        grid=(B, n_hb),
        in_specs=[_spec((1, Th, Wp, C), lambda b, r: (b, r, 0, 0), bufs=3),
                  _spec((1, 4, Wp, C), x2_map)],
        out_specs=pl.BlockSpec((1, Th, Wo, C), lambda b, r: (b, r, 0, 0)),
        compiler_params=pltpu.CompilerParams(
            dimension_semantics=("parallel", "parallel"),
            vmem_limit_bytes=VMEM_LIMIT),
    )(xp, xp)


# ----------------------------------------------------------------------------
# Minibatch stddev feature (stddev_group=4, stddev_feat=1) -- tiny (4x4 maps).
# ----------------------------------------------------------------------------
def _make_stddev_kernel(B, H, W, C, group):
    N = B // group

    def kernel(x_ref, o_ref):
        x = x_ref[...].astype(jnp.float32)               # (B, H, W, C)
        xg = x.reshape(group, N * H * W, C)
        mean = jnp.mean(xg, axis=0, keepdims=True)
        var = jnp.mean((xg - mean) ** 2, axis=0)         # unbiased=False
        std = jnp.sqrt(var + 1e-8)
        s = jnp.mean(std.reshape(N, H * W * C), axis=1)  # mean over C,H,W -> (N,)
        sg = jnp.broadcast_to(s.reshape(1, N, 1), (group, N, H * W))
        o_ref[...] = sg.reshape(B, H * W).astype(o_ref.dtype)
    return kernel


def minibatch_stddev(x, stddev_group=4):
    B, H, W, C = x.shape
    group = min(B, stddev_group)
    s = _pcall(_make_stddev_kernel(B, H, W, C, group), (B, H * W), jnp.bfloat16, x)
    s = s.reshape(B, H, W, 1)
    return jnp.concatenate([x.astype(jnp.bfloat16), s], axis=-1)


# ----------------------------------------------------------------------------
# Fused final EqualLinear stack: (C*16 -> C, fused_lrelu) then (C -> 1).
# ----------------------------------------------------------------------------
def _fused_linear_kernel(x_ref, w1_ref, b1_ref, w2_ref, b2_ref, o_ref):
    h = jnp.dot(x_ref[...], w1_ref[...], preferred_element_type=jnp.float32)
    h = h + b1_ref[...]
    h = jnp.where(h >= 0.0, h, LRELU_SLOPE * h) * SQRT2
    out = jnp.dot(h.astype(jnp.bfloat16), w2_ref[...],
                  preferred_element_type=jnp.float32)
    out = out + b2_ref[...]
    o_ref[...] = out.astype(o_ref.dtype)


def final_linear(x, p1, p2):
    w1 = (p1['w'] * p1['scale']).astype(jnp.bfloat16)
    b1 = (p1['bias'] * p1['lr_mul']).reshape(1, -1).astype(jnp.float32)
    w2 = (p2['w'] * p2['scale']).astype(jnp.bfloat16)
    b2 = (p2['bias'] * p2['lr_mul']).reshape(1, -1).astype(jnp.float32)
    return _pcall(_fused_linear_kernel, (x.shape[0], w2.shape[1]), jnp.float32,
                  x.astype(jnp.bfloat16), w1, b1, w2, b2)


# ----------------------------------------------------------------------------
# Layer wrappers (ConvLayer / ResBlock dispatch).
# ----------------------------------------------------------------------------
def conv_layer(x, p, residual=None):
    K = p['k']
    w = p['w'] * p['scale']
    bias = p.get('bias')
    if p['downsample']:
        ppad = (4 - 2) + (K - 1)               # Blur pad rule from ConvLayer
        pad0, pad1 = (ppad + 1) // 2, ppad // 2
        xb = blur(x, pad0, pad1)
        if K == 1:                             # skip: subsample + 1x1 matmul
            xs = xb[:, ::2, ::2, :]
            return conv1x1(xs, w, bias, activate=p['activate'], residual=residual)
        # TODO(synk): the stride-2 3x3 conv still materialises an HBM im2col
        # (~2.25x of its input); folding its taps in-kernel needs strided
        # sublane gathers and is left for a follow-up.
        return conv_im2col(xb, w, bias, K=K, stride=2, padding=0,
                           activate=p['activate'], residual=residual)
    if K == 1:
        return conv1x1(x, w, bias, activate=p['activate'], residual=residual)
    assert residual is None
    return conv3x3_s1(x, w, bias, activate=p['activate'])


# ----------------------------------------------------------------------------
# Parameter construction (deterministic synthetic weights; zero biases as in
# the original __init__).
# ----------------------------------------------------------------------------
def init_discriminator_params(key, size, channel_multiplier=2, img_channel=3):
    cm = channel_multiplier
    channels = {4: 512, 8: 512, 16: 512, 32: 512, 64: 256 * cm, 128: 128 * cm,
                256: 64 * cm, 512: 32 * cm, 1024: 16 * cm}
    keys = iter(jax.random.split(key, 64))

    def conv_params(cin, cout, k, downsample=False, activate=True, bias=True):
        w = jax.random.normal(next(keys), (k, k, cin, cout), jnp.float32)
        p = {'w': w, 'scale': 1.0 / math.sqrt(cin * k * k), 'k': k,
             'downsample': downsample, 'activate': activate}
        if bias:
            p['bias'] = jnp.zeros((cout,), jnp.float32)
        return p

    def linear_params(cin, cout, activate=False, lr_mul=1.0):
        w = jax.random.normal(next(keys), (cin, cout), jnp.float32) / lr_mul
        return {'w': w, 'scale': (1.0 / math.sqrt(cin)) * lr_mul,
                'lr_mul': lr_mul,                     # bias * lr_mul at forward
                'bias': jnp.zeros((cout,), jnp.float32),
                'activate': activate}

    log_size = int(math.log(size, 2))
    convs = [('conv', conv_params(img_channel, channels[size], 1))]
    in_channel = channels[size]
    for i in range(log_size, 2, -1):
        out_channel = channels[2 ** (i - 1)]
        convs.append(('res', {
            'conv1': conv_params(in_channel, in_channel, 3),
            'conv2': conv_params(in_channel, out_channel, 3, downsample=True),
            'skip': conv_params(in_channel, out_channel, 1, downsample=True,
                                activate=False, bias=False),
        }))
        in_channel = out_channel

    return {
        'convs': convs,
        'final_conv': conv_params(in_channel + 1, channels[4], 3),
        'final_linear': [
            linear_params(channels[4] * 4 * 4, channels[4], activate=True),
            linear_params(channels[4], 1, activate=False),
        ],
        'size': size,
    }


# ----------------------------------------------------------------------------
# Discriminator forward (mirrors the PyTorch module).
# ----------------------------------------------------------------------------
def discriminator_forward(params, x_nchw):
    size = params['size']
    # torch.randint(0, h + 1 - size): with h == w == size the offset is always 0.
    # TODO(synk): host-side torch RNG for the random crop is not reproduced; offset fixed to 0.
    i = j = 0
    x = x_nchw[:, :, i:i + size, j:j + size]
    x = jnp.transpose(x, (0, 2, 3, 1)).astype(jnp.bfloat16)   # NCHW -> NHWC, bf16 acts

    for kind, p in params['convs']:
        if kind == 'conv':
            x = conv_layer(x, p)
        else:  # ResBlock: out = (conv2(conv1(x)) + skip(x)) / sqrt(2)
            out = conv_layer(x, p['conv1'])
            out = conv_layer(out, p['conv2'])
            x = conv_layer(x, p['skip'], residual=out)        # residual fused in-kernel

    x = minibatch_stddev(x, stddev_group=4)
    x = conv_layer(x, params['final_conv'])

    Bc, Hc, Wc, Cc = x.shape
    x = jnp.transpose(x, (0, 3, 1, 2)).reshape(Bc, Cc * Hc * Wc)  # NCHW flatten order

    return final_linear(x, params['final_linear'][0], params['final_linear'][1])


if __name__ == "__main__":
    key = jax.random.PRNGKey(0)
    pkey, xkey = jax.random.split(key)
    size = 8
    params = init_discriminator_params(pkey, size=size, channel_multiplier=2, img_channel=3)
    x = jax.random.normal(xkey, (2, 3, size, size), jnp.float32)   # NCHW, h == w == size
    out = discriminator_forward(params, x)
    out = jax.block_until_ready(out)
    assert out.shape == (2, 1), out.shape
    assert bool(jnp.all(jnp.isfinite(out)))
    print("KERNEL_OK")
</pallas_src>

<mosaic_0001>
module attributes {stable_mosaic.version = 11 : i64} {
  func.func @kernel(%arg0: i32, %arg1: memref<128x3xbf16, #tpu.memory_space<vmem>>, %arg2: memref<3x512xbf16, #tpu.memory_space<vmem>>, %arg3: memref<1x512xf32, #tpu.memory_space<vmem>>, %arg4: memref<128x512xbf16, #tpu.memory_space<vmem>>) attributes {dimension_semantics = [#tpu.dimension_semantics<parallel>], iteration_bounds = array<i64: 1>, scalar_prefetch = 0 : i64, scratch_operands = 0 : i64, tpu.core_type = #tpu.core_type<tc>, window_params = [{transform_indices = @transform_0, window_bounds = array<i64: 128, 3>}, {pipeline_mode = #tpu.pipeline_mode<synchronous>, transform_indices = @transform_1, window_bounds = array<i64: 3, 512>}, {pipeline_mode = #tpu.pipeline_mode<synchronous>, transform_indices = @transform_2, window_bounds = array<i64: 1, 512>}, {transform_indices = @transform_3, window_bounds = array<i64: 128, 512>}]} {
    %c0 = arith.constant 0 : index
    %c0_0 = arith.constant 0 : index
    %0 = vector.load %arg1[%c0, %c0_0] : memref<128x3xbf16, #tpu.memory_space<vmem>>, vector<128x3xbf16>
    %c0_1 = arith.constant 0 : index
    %c0_2 = arith.constant 0 : index
    %1 = vector.load %arg2[%c0_1, %c0_2] : memref<3x512xbf16, #tpu.memory_space<vmem>>, vector<3x512xbf16>
    %cst = arith.constant dense<0.000000e+00> : vector<128x512xf32>
    %2 = tpu.matmul %0, %1, %cst {dimension_numbers = #tpu.dot_dimension_numbers<[1], [0], [0], [1], [0, 0, 1, 1], [], []>} : vector<128x3xbf16>, vector<3x512xbf16>, vector<128x512xf32> -> vector<128x512xf32>
    %c0_3 = arith.constant 0 : index
    %c0_4 = arith.constant 0 : index
    %3 = vector.load %arg3[%c0_3, %c0_4] : memref<1x512xf32, #tpu.memory_space<vmem>>, vector<1x512xf32>
    %4 = vector.broadcast %3 : vector<1x512xf32> to vector<128x512xf32>
    %5 = arith.addf %2, %4 : vector<128x512xf32>
    %cst_5 = arith.constant 0.000000e+00 : f32
    %6 = vector.broadcast %cst_5 : f32 to vector<128x512xf32>
    %7 = arith.cmpf oge, %5, %6 : vector<128x512xf32>
    %cst_6 = arith.constant 2.000000e-01 : f32
    %8 = vector.broadcast %cst_6 : f32 to vector<128x512xf32>
    %9 = arith.mulf %8, %5 : vector<128x512xf32>
    %10 = arith.select %7, %5, %9 : vector<128x512xi1>, vector<128x512xf32>
    %cst_7 = arith.constant 1.41421354 : f32
    %11 = vector.broadcast %cst_7 : f32 to vector<128x512xf32>
    %12 = arith.mulf %10, %11 : vector<128x512xf32>
    %13 = arith.truncf %12 : vector<128x512xf32> to vector<128x512xbf16>
    %c0_8 = arith.constant 0 : index
    %c0_9 = arith.constant 0 : index
    %14 = vector.load %arg4[%c0_8, %c0_9] : memref<128x512xbf16, #tpu.memory_space<vmem>>, vector<128x512xbf16>
    tpu.vector_store %arg4[%c0_8, %c0_9], %13 {strides = array<i32>} : memref<128x512xbf16, #tpu.memory_space<vmem>>, vector<128x512xbf16>,
    return
  }
  func.func @transform_0(%arg0: i32) -> (i32, i32) {
    %c0_i32 = arith.constant 0 : i32
    %c0_i32_0 = arith.constant 0 : i32
    return %arg0, %c0_i32 : i32, i32
  }
  func.func @transform_1(%arg0: i32) -> (i32, i32) {
    %c0_i32 = arith.constant 0 : i32
    %c0_i32_0 = arith.constant 0 : i32
    %c0_i32_1 = arith.constant 0 : i32
    return %c0_i32, %c0_i32_0 : i32, i32
  }
  func.func @transform_2(%arg0: i32) -> (i32, i32) {
    %c0_i32 = arith.constant 0 : i32
    %c0_i32_0 = arith.constant 0 : i32
    %c0_i32_1 = arith.constant 0 : i32
    return %c0_i32, %c0_i32_0 : i32, i32
  }
  func.func @transform_3(%arg0: i32) -> (i32, i32) {
    %c0_i32 = arith.constant 0 : i32
    %c0_i32_0 = arith.constant 0 : i32
    return %arg0, %c0_i32 : i32, i32
  }
}

</mosaic_0001>

<bundles_post_ra>
// kernel: tpu_custom_call.1
= control target key start
LH: loop header
LB: loop body
LE: loop exit
PB: predicated region body
PF: predicated region fallthrough
CT: control target
= control target key end

     0   :  { %8 = vsyncpa [#allocation3], 0  ;;  %s1398_s0 = inlined_call_operand.hbm [shape: bf16[128,3], index: 0, kind: input, shape index: {}]   ;;  %s1399_s1 = inlined_call_operand.hbm [shape: bf16[3,512], index: 1, kind: input, shape index: {}]   ;;  %s1400_s2 = inlined_call_operand.hbm [shape: f32[1,512], index: 2, kind: input, shape index: {}]   ;;  %s1401_s3 = inlined_call_operand.hbm [shape: bf16[128,512], index: 3, kind: output, shape index: {}]  }
   0x1   :  { %9 = vsyncpa [#allocation6], 0 }
   0x2   :  { %10 = vsyncpa [#allocation4], 0  ;;  %s1117_s12 = smov [#allocation5]   ;;  %s1118_s14 = smov [#allocation2]  }
   0x3   :  { %s29_s13 = sshll.u32 %s1117_s12, 4  ;;  %s16_s15 = sshll.u32 %s1118_s14, 4  ;;  %s30_s13 = int_to_ptr.vmem [resolvable:$true] %s29_s13  ;;  %s1148_s15 = int_to_ptr.vmem [resolvable:$true] %s16_s15 }
   0x4   :  { %s1023_s18 = scalar_lea.hbm %s1399_s1, 128 }
   0x5   :  { %p1024_p0 = scmp.ne.s32.totalorder %s1399_s1, %s1023_s18  ;;  %p1027_p1 = scmp.lt.u32.totalorder %s1023_s18, %s1399_s1 }
   0x7   :  { %p1029_p2 = pnand %p1027_p1, %p1024_p0 }
   0x9   :  { %1032 = shalt.err (!%p1029_p2)
}
   0xa   :  { %s1033_s23 = scalar_lea.vmem %s30_s13, 128  ;;  %p1038_p4 = scmp.lt.s32.totalorder %s30_s13, %s30_s13 }
   0xb   :  { %p1034_p3 = scmp.ne.s32.totalorder %s30_s13, %s1033_s23  ;;  %p1039_p5 = scmp.lt.s32.totalorder %s1033_s23, %s1033_s23 }
   0xd   :  { %p1040_p6 = por %p1039_p5, %p1038_p4 }
   0xf   :  { %p1041_p7 = pnand %p1040_p6, %p1034_p3 }
  0x11   :  { %1044 = shalt.err (!%p1041_p7)
}
  0x12   :  { %32 = dma.hbm_to_vmem [thread:$0]  %s1399_s1, 128, %s30_s13, [#allocation6]  }
  0x13   :  { %s1045_s28 = scalar_lea.hbm %s1398_s0, 1024 }
  0x14   :  { %p1046_p8 = scmp.ne.s32.totalorder %s1398_s0, %s1045_s28  ;;  %p1049_p9 = scmp.lt.u32.totalorder %s1045_s28, %s1398_s0 }
  0x16   :  { %p1051_p10 = pnand %p1049_p9, %p1046_p8 }
  0x18   :  { %1054 = shalt.err (!%p1051_p10)
}
  0x19   :  { %s1055_s6 = scalar_lea.vmem %s1148_s15, 1024  ;;  %p1060_p12 = scmp.lt.s32.totalorder %s1148_s15, %s1148_s15 }
  0x1a   :  { %p1056_p11 = scmp.ne.s32.totalorder %s1148_s15, %s1055_s6  ;;  %p1061_p13 = scmp.lt.s32.totalorder %s1055_s6, %s1055_s6 }
  0x1c   :  { %p1062_p0 = por %p1061_p13, %p1060_p12 }
  0x1e   :  { %p1063_p1 = pnand %p1062_p0, %p1056_p11 }
  0x20   :  { %1066 = shalt.err (!%p1063_p1)
}
  0x21   :  { %s1119_s1 = smov 64   ;;  %s1120_s7 = smov 4  }
  0x22   :  { %22 = dma.hbm_to_vmem [thread:$0]  %s1398_s0, 1024, %s1148_s15, [#allocation3], %s1119_s1, %s1119_s1, %s1120_s7  }
  0x23   :  { %s1121_s10 = smov [#allocation7]   ;;  %s1067_s14 = scalar_lea.hbm %s1400_s2, 64 }
  0x24   :  { %s39_s11 = sshll.u32 %s1121_s10, 4  ;;  %p1068_p2 = scmp.ne.s32.totalorder %s1400_s2, %s1067_s14  ;;  %s40_s11 = int_to_ptr.vmem [resolvable:$true] %s39_s11 }
  0x25   :  { %p1071_p3 = scmp.lt.u32.totalorder %s1067_s14, %s1400_s2 }
  0x27   :  { %p1073_p4 = pnand %p1071_p3, %p1068_p2 }
  0x29   :  { %1076 = shalt.err (!%p1073_p4)
}
  0x2a   :  { %s1077_s20 = scalar_lea.vmem %s40_s11, 64  ;;  %p1082_p6 = scmp.lt.s32.totalorder %s40_s11, %s40_s11 }
  0x2b   :  { %p1078_p5 = scmp.ne.s32.totalorder %s40_s11, %s1077_s20  ;;  %p1083_p7 = scmp.lt.s32.totalorder %s1077_s20, %s1077_s20 }
  0x2d   :  { %p1084_p8 = por %p1083_p7, %p1082_p6 }
  0x2f   :  { %p1085_p9 = pnand %p1084_p8, %p1078_p5 }
  0x31   :  { %1088 = shalt.err (!%p1085_p9)
}
  0x32   :  { %42 = dma.hbm_to_vmem [thread:$0]  %s1400_s2, 64, %s40_s11, [#allocation6]  }
  0x33   :  { %1111 = dma.done.wait [#allocation3], 1024  }
  0x34   :  { %1112 = vsyncadd [#allocation3], 4294966272 }
  0x35   :  { %1113 = dma.done.wait [#allocation6], 192  }
  0x36   :  { %1114 = vsyncadd [#allocation6], 4294967104  ;;  %v72_v0 = vlaneseq  ;;  %v1122_v1 = vmov 1983009808   ;;  %vm175_vm0 = vcmask 1040384   ;;  %v1123_v4 = vmov 0  }
  0x37   :  { %v135_v2 = vunpack.c.l.s4 %v1122_v1  ;;  %223 = vmatprep.mubr.bf16.mxu0 %v1123_v4  ;;  %336 = vmatprep.mubr.bf16.mxu1 %v1123_v4  ;;  %vm176_vm1 = vcmask 1041408   ;;  %v1124_v7 = vmov 65535   ;;  %v69_v9 = vld [vmem:[#allocation5] sm:$0xff]  ;;  %vm150_vm2 = vcmask 23552   ;;  %v1016_v21 = vld [vmem:[#allocation2 + $0x8] sm:$0xff]   ;;  %v1017_v22 = vld [vmem:[#allocation2 + $0x10] sm:$0xff]  }
  0x38   :  { %v1191_v3 = vshrl.u32 %v72_v0, 7  ;;  %v177_v8 = vsel %vm175_vm0, 4294967295, %v1124_v7  ;;  %v133_v12 = vcombine.high %v69_v9, %v69_v9  ;;  %v1015_v20 = vld [vmem:[#allocation2] sm:$0xff]   ;;  %v1018_v23 = vld [vmem:[#allocation2 + $0x18] sm:$0xff]   ;;  %v1020_v25 = vld [vmem:[#allocation2 + $0x28] sm:$0xff]   ;;  %s1125_s2 = smov [#allocation8]  }
  0x39   :  { %v136_v5 = vunpack.c.0.s8 %v135_v2  ;;  %v178_v11 = vsel %vm176_vm1, %v177_v8, 0  ;;  %v1019_v24 = vld [vmem:[#allocation2 + $0x20] sm:$0xff]   ;;  %v1021_v26 = vld [vmem:[#allocation2 + $0x30] sm:$0xff]   ;;  %v1022_v27 = vld [vmem:[#allocation2 + $0x38] sm:$0xff]   ;;  %s902_s21 = sshll.u32 %s1125_s2, 4  ;;  %s903_s21 = int_to_ptr.vmem [resolvable:$true] %s902_s21 }
  0x3a   :  { %v74_v28 = vsub.s32 0, %v1191_v3  ;;  %v70_v29 = vld [vmem:[#allocation7] sm:$0xf]  ;;  %v78_v30 = vsub.s32 1, %v1191_v3  ;;  %v82_v31 = vsub.s32 2, %v1191_v3  ;;  %v86_v32 = vsub.s32 3, %v1191_v3  ;;  %p1094_p11 = scmp.lt.s32.totalorder %s903_s21, %s903_s21 }
  0x3b   :  { %v139_v6 = vsub.s32 %v136_v5, %v1191_v3  ;;  %s1089_s22 = scalar_lea.vmem %s903_s21, 4096 }
  0x3c   :  { %v1214_v33 = vrot.slane %v70_v29, %v74_v28  ;;  %v1216_v34 = vrot.slane %v70_v29, %v78_v30  ;;  %v1218_v35 = vrot.slane %v70_v29, %v82_v31  ;;  %v1220_v37 = vrot.slane %v70_v29, %v86_v32  ;;  %p1090_p10 = scmp.ne.s32.totalorder %s903_s21, %s1089_s22  ;;  %p1095_p12 = scmp.lt.s32.totalorder %s1089_s22, %s1089_s22 }
  0x3d   :  { %v140_v10 = vrot.slane %v69_v9, %v139_v6  ;;  %v147_v14 = vrot.slane %v133_v12, %v139_v6 }
  0x3e   :  { %p1096_p13 = por %p1095_p12, %p1094_p11 }
  0x3f   :  { %v148_v13 = vcombine.high %v140_v10, %v140_v10  ;;  %v180_v15 = vand.u32 %v178_v11, %v140_v10  ;;  %v149_v17 = vcombine.high %v147_v14, %v147_v14  ;;  %v186_v18 = vand.u32 %v178_v11, %v147_v14 }
  0x40   :  { %p1097_p0 = pnand %p1096_p13, %p1090_p10 }
  0x41   :  { %v183_v16 = vand.u32 %v178_v11, %v148_v13  ;;  %v189_v19 = vand.u32 %v178_v11, %v149_v17 }
  0x43   :  { %191 = vmatprep.subr.bf16.mxu0 %v183_v16  ;;  %304 = vmatprep.subr.bf16.mxu1 %v189_v19 }
  0x44   :  { %192 = vmatpush1.bf16.msra.mxu0 %v180_v15  ;;  %305 = vmatpush1.bf16.msra.mxu1 %v186_v18 }
  0x47   :  { %923 = vmatmul.mubr.msk.bf16.vlgmr.msra.gmra.mrb[0].mxu0 %vm150_vm2, %v1015_v20  ;;  %931 = vmatmul.mubr.msk.bf16.vlgmr.msra.gmra.mrb[0].mxu1 %vm150_vm2, %v1015_v20 }
  0x48   :  { %233 = vmatprep.mubr.bf16.mxu0 %v1123_v4  ;;  %346 = vmatprep.mubr.bf16.mxu1 %v1123_v4 }
  0x4f   :  { %924 = vmatmul.mubr.msk.bf16.gmra.mrb[4].mxu0 %vm150_vm2, %v1016_v21  ;;  %932 = vmatmul.mubr.msk.bf16.gmra.mrb[4].mxu1 %vm150_vm2, %v1016_v21 }
  0x50   :  { %243 = vmatprep.mubr.bf16.mxu0 %v1123_v4  ;;  %356 = vmatprep.mubr.bf16.mxu1 %v1123_v4 }
  0x57   :  { %925 = vmatmul.mubr.msk.bf16.gmra.mrb[8].mxu0 %vm150_vm2, %v1017_v22  ;;  %933 = vmatmul.mubr.msk.bf16.gmra.mrb[8].mxu1 %vm150_vm2, %v1017_v22 }
  0x58   :  { %253 = vmatprep.mubr.bf16.mxu0 %v1123_v4  ;;  %366 = vmatprep.mubr.bf16.mxu1 %v1123_v4 }
  0x5f   :  { %926 = vmatmul.mubr.msk.bf16.gmra.mrb[12].mxu0 %vm150_vm2, %v1018_v23  ;;  %934 = vmatmul.mubr.msk.bf16.gmra.mrb[12].mxu1 %vm150_vm2, %v1018_v23 }
  0x60   :  { %263 = vmatprep.mubr.bf16.mxu0 %v1123_v4  ;;  %376 = vmatprep.mubr.bf16.mxu1 %v1123_v4 }
  0x67   :  { %927 = vmatmul.mubr.msk.bf16.gmra.mrb[16].mxu0 %vm150_vm2, %v1019_v24  ;;  %935 = vmatmul.mubr.msk.bf16.gmra.mrb[16].mxu1 %vm150_vm2, %v1019_v24 }
  0x68   :  { %273 = vmatprep.mubr.bf16.mxu0 %v1123_v4  ;;  %386 = vmatprep.mubr.bf16.mxu1 %v1123_v4 }
  0x6f   :  { %928 = vmatmul.mubr.msk.bf16.gmra.mrb[20].mxu0 %vm150_vm2, %v1020_v25  ;;  %936 = vmatmul.mubr.msk.bf16.gmra.mrb[20].mxu1 %vm150_vm2, %v1020_v25 }
  0x70   :  { %283 = vmatprep.mubr.bf16.mxu0 %v1123_v4  ;;  %396 = vmatprep.mubr.bf16.mxu1 %v1123_v4 }
  0x77   :  { %929 = vmatmul.mubr.msk.bf16.gmra.mrb[24].mxu0 %vm150_vm2, %v1021_v26  ;;  %937 = vmatmul.mubr.msk.bf16.gmra.mrb[24].mxu1 %vm150_vm2, %v1021_v26 }
  0x78   :  { %293 = vmatprep.mubr.bf16.mxu0 %v1123_v4  ;;  %406 = vmatprep.mubr.bf16.mxu1 %v1123_v4 }
  0x7f   :  { %930 = vmatmul.mubr.msk.bf16.gmra.mrb[28].mxu0 %vm150_vm2, %v1022_v27  ;;  %938 = vmatmul.mubr.msk.bf16.gmra.mrb[28].mxu1 %vm150_vm2, %v1022_v27 }
 0x11a   :  { %v225_v36 = vpop.f32.mrb[0].mxu0  ;;  %v338_v42 = vpop.f32.mrb[0].mxu1 }
 0x11b   :  { %v226_v38 = vadd.f32 %v225_v36, %v1214_v33  ;;  %v227_v39 = vpop.f32.mrb[1].mxu0  ;;  %v339_v45 = vadd.f32 %v338_v42, %v1218_v35  ;;  %v340_v47 = vpop.f32.mrb[1].mxu1 }
 0x11c   :  { %v228_v40 = vadd.f32 %v227_v39, %v1216_v34  ;;  %v229_v41 = vpop.f32.mrb[2].mxu0  ;;  %v341_v50 = vadd.f32 %v340_v47, %v1220_v37  ;;  %v342_v51 = vpop.f32.mrb[2].mxu1 }
 0x11d   :  { %vm417_vm3 = vcmp.ge.f32.partialorder %v226_v38, 0.0  ;;  %v481_v43 = vmul.f32 0.2, %v226_v38  ;;  %v230_v44 = vadd.f32 %v229_v41, %v1214_v33  ;;  %v231_v46 = vpop.f32.mrb[3].mxu0  ;;  %vm419_vm6 = vcmp.ge.f32.partialorder %v339_v45, 0.0  ;;  %v344_v54 = vpop.f32.mrb[3].mxu1 }
 0x11e   :  { %vm418_vm4 = vcmp.ge.f32.partialorder %v228_v40, 0.0  ;;  %v482_v48 = vmul.f32 0.2, %v228_v40  ;;  %v232_v49 = vadd.f32 %v231_v46, %v1216_v34  ;;  %v483_v57 = vmul.f32 0.2, %v339_v45 }
 0x11f   :  { %v545_v52 = vsel %vm417_vm3, %v226_v38, %v481_v43  ;;  %vm421_vm5 = vcmp.ge.f32.partialorder %v230_v44, 0.0  ;;  %v485_v53 = vmul.f32 0.2, %v230_v44  ;;  %vm420_vm8 = vcmp.ge.f32.partialorder %v341_v50, 0.0 }
 0x120   :  { %v609_v55 = vmul.f32 1.4142135, %v545_v52  ;;  %v546_v56 = vsel %vm418_vm4, %v228_v40, %v482_v48  ;;  %vm422_vm7 = vcmp.ge.f32.partialorder %v232_v49, 0.0  ;;  %v486_v60 = vmul.f32 0.2, %v232_v49 }
 0x121   :  { %v610_v58 = vmul.f32 1.4142135, %v546_v56  ;;  %v549_v59 = vsel %vm421_vm5, %v230_v44, %v485_v53  ;;  %v547_v62 = vsel %vm419_vm6, %v339_v45, %v483_v57  ;;  %v484_v63 = vmul.f32 0.2, %v341_v50 }
 0x122   :  { %v613_v61 = vmul.f32 1.4142135, %v549_v59  ;;  %v343_v0 = vadd.f32 %v342_v51, %v1218_v35  ;;  %v235_v1 = vpop.f32.mrb[4].mxu0  ;;  %v611_v3 = vmul.f32 1.4142135, %v547_v62  ;;  %v550_v4 = vsel %vm422_vm7, %v232_v49, %v486_v60  ;;  %v348_v14 = vpop.f32.mrb[4].mxu1 }
 0x123   :  { %v971_v2 = vpack.c.bf16 %v610_v58, %v609_v55  ;;  %v345_v5 = vadd.f32 %v344_v54, %v1220_v37  ;;  %v237_v6 = vpop.f32.mrb[5].mxu0  ;;  %v614_v7 = vmul.f32 1.4142135, %v550_v4  ;;  %v548_v8 = vsel %vm420_vm8, %v341_v50, %v484_v63  ;;  %v350_v20 = vpop.f32.mrb[5].mxu1 }
 0x124   :  { %vm423_vm9 = vcmp.ge.f32.partialorder %v343_v0, 0.0  ;;  %v487_v9 = vmul.f32 0.2, %v343_v0  ;;  %v239_v10 = vpop.f32.mrb[6].mxu0  ;;  %v612_v11 = vmul.f32 1.4142135, %v548_v8  ;;  %v236_v13 = vadd.f32 %v235_v1, %v1214_v33 }
 0x125   :  { %865 = vst [vmem:[#allocation8] sm:$0xff] %v971_v2  ;;  %vm424_vm10 = vcmp.ge.f32.partialorder %v345_v5, 0.0  ;;  %v488_v12 = vmul.f32 0.2, %v345_v5  ;;  %v973_v15 = vpack.c.bf16 %v614_v7, %v613_v61  ;;  %v238_v17 = vadd.f32 %v237_v6, %v1216_v34  ;;  %v241_v19 = vpop.f32.mrb[7].mxu0  ;;  %v352_v24 = vpop.f32.mrb[6].mxu1 }
 0x126   :  { %v551_v16 = vsel %vm423_vm9, %v343_v0, %v487_v9  ;;  %v240_v18 = vadd.f32 %v239_v10, %v1214_v33  ;;  %v972_v21 = vpack.c.bf16 %v612_v11, %v611_v3  ;;  %vm425_vm11 = vcmp.ge.f32.partialorder %v236_v13, 0.0  ;;  %v354_v31 = vpop.f32.mrb[7].mxu1 }
 0x127   :  { %v615_v22 = vmul.f32 1.4142135, %v551_v16  ;;  %v552_v23 = vsel %vm424_vm10, %v345_v5, %v488_v12  ;;  %867 = vst [vmem:[#allocation8 + $0x10] sm:$0xff] %v973_v15  ;;  %v489_v26 = vmul.f32 0.2, %v236_v13  ;;  %vm426_vm12 = vcmp.ge.f32.partialorder %v238_v17, 0.0 }
 0x128   :  { %v616_v25 = vmul.f32 1.4142135, %v552_v23  ;;  %vm429_vm13 = vcmp.ge.f32.partialorder %v240_v18, 0.0  ;;  %866 = vst [vmem:[#allocation8 + $0x8] sm:$0xff] %v972_v21  ;;  %v490_v27 = vmul.f32 0.2, %v238_v17  ;;  %v349_v29 = vadd.f32 %v348_v14, %v1218_v35 }
 0x129   :  { %v493_v28 = vmul.f32 0.2, %v240_v18  ;;  %v242_v30 = vadd.f32 %v241_v19, %v1216_v34  ;;  %v553_v36 = vsel %vm425_vm11, %v236_v13, %v489_v26  ;;  %v351_v38 = vadd.f32 %v350_v20, %v1220_v37 }
 0x12a   :  { %v974_v32 = vpack.c.bf16 %v616_v25, %v615_v22  ;;  %v353_v39 = vadd.f32 %v352_v24, %v1218_v35  ;;  %v245_v40 = vpop.f32.mrb[8].mxu0  ;;  %v617_v41 = vmul.f32 1.4142135, %v553_v36  ;;  %v554_v42 = vsel %vm426_vm12, %v238_v17, %v490_v27  ;;  %v358_v55 = vpop.f32.mrb[8].mxu1 }
 0x12b   :  { %v557_v43 = vsel %vm429_vm13, %v240_v18, %v493_v28  ;;  %vm427_vm14 = vcmp.ge.f32.partialorder %v349_v29, 0.0  ;;  %v247_v44 = vpop.f32.mrb[9].mxu0  ;;  %v618_v45 = vmul.f32 1.4142135, %v554_v42  ;;  %v491_v47 = vmul.f32 0.2, %v349_v29 }
 0x12c   :  { %868 = vst [vmem:[#allocation8 + $0x18] sm:$0xff] %v974_v32  ;;  %v621_v46 = vmul.f32 1.4142135, %v557_v43  ;;  %v355_v48 = vadd.f32 %v354_v31, %v1220_v37  ;;  %vm430_vm15 = vcmp.ge.f32.partialorder %v242_v30, 0.0  ;;  %v494_v49 = vmul.f32 0.2, %v242_v30 }
 0x12d   :  { %vm428_vm0 = vcmp.ge.f32.partialorder %v351_v38, 0.0  ;;  %v492_v50 = vmul.f32 0.2, %v351_v38  ;;  %v975_v51 = vpack.c.bf16 %v618_v45, %v617_v41  ;;  %v555_v52 = vsel %vm427_vm14, %v349_v29, %v491_v47  ;;  %v249_v54 = vpop.f32.mrb[10].mxu0  ;;  %v360_v60 = vpop.f32.mrb[9].mxu1 }
 0x12e   :  { %vm431_vm1 = vcmp.ge.f32.partialorder %v353_v39, 0.0  ;;  %v495_v53 = vmul.f32 0.2, %v353_v39  ;;  %v619_v56 = vmul.f32 1.4142135, %v555_v52  ;;  %v558_v57 = vsel %vm430_vm15, %v242_v30, %v494_v49  ;;  %v251_v59 = vpop.f32.mrb[11].mxu0 }
 0x12f   :  { %v556_v58 = vsel %vm428_vm0, %v351_v38, %v492_v50  ;;  %vm432_vm2 = vcmp.ge.f32.partialorder %v355_v48, 0.0  ;;  %869 = vst [vmem:[#allocation8 + $0x20] sm:$0xff] %v975_v51  ;;  %v622_v61 = vmul.f32 1.4142135, %v558_v57  ;;  %v496_v0 = vmul.f32 0.2, %v355_v48 }
 0x130   :  { %v620_v62 = vmul.f32 1.4142135, %v556_v58  ;;  %v559_v63 = vsel %vm431_vm1, %v353_v39, %v495_v53  ;;  %v246_v2 = vadd.f32 %v245_v40, %v1214_v33  ;;  %v248_v3 = vadd.f32 %v247_v44, %v1216_v34  ;;  %v362_v5 = vpop.f32.mrb[10].mxu1 }
 0x131   :  { %v623_v1 = vmul.f32 1.4142135, %v559_v63  ;;  %v250_v4 = vadd.f32 %v249_v54, %v1214_v33  ;;  %v977_v6 = vpack.c.bf16 %v622_v61, %v621_v46  ;;  %v560_v8 = vsel %vm432_vm2, %v355_v48, %v496_v0  ;;  %v364_v10 = vpop.f32.mrb[11].mxu1 }
 0x132   :  { %v976_v7 = vpack.c.bf16 %v620_v62, %v619_v56  ;;  %v359_v9 = vadd.f32 %v358_v55, %v1218_v35  ;;  %v255_v11 = vpop.f32.mrb[12].mxu0  ;;  %v624_v12 = vmul.f32 1.4142135, %v560_v8  ;;  %vm433_vm3 = vcmp.ge.f32.partialorder %v246_v2, 0.0  ;;  %v368_v21 = vpop.f32.mrb[12].mxu1 }
 0x133   :  { %v497_v13 = vmul.f32 0.2, %v246_v2  ;;  %vm434_vm4 = vcmp.ge.f32.partialorder %v248_v3, 0.0  ;;  %871 = vst [vmem:[#allocation8 + $0x30] sm:$0xff] %v977_v6  ;;  %v498_v14 = vmul.f32 0.2, %v248_v3  ;;  %v252_v19 = vadd.f32 %v251_v59, %v1216_v34 }
 0x134   :  { %870 = vst [vmem:[#allocation8 + $0x28] sm:$0xff] %v976_v7  ;;  %vm437_vm5 = vcmp.ge.f32.partialorder %v250_v4, 0.0  ;;  %v501_v15 = vmul.f32 0.2, %v250_v4  ;;  %vm435_vm6 = vcmp.ge.f32.partialorder %v359_v9, 0.0  ;;  %v978_v16 = vpack.c.bf16 %v624_v12, %v623_v1  ;;  %v257_v20 = vpop.f32.mrb[13].mxu0 }
 0x135   :  { %v561_v17 = vsel %vm433_vm3, %v246_v2, %v497_v13  ;;  %v499_v18 = vmul.f32 0.2, %v359_v9  ;;  %v562_v23 = vsel %vm434_vm4, %v248_v3, %v498_v14  ;;  %v361_v25 = vadd.f32 %v360_v60, %v1220_v37  ;;  %v259_v26 = vpop.f32.mrb[14].mxu0  ;;  %v370_v27 = vpop.f32.mrb[13].mxu1 }
 0x136   :  { %v625_v22 = vmul.f32 1.4142135, %v561_v17  ;;  %v565_v24 = vsel %vm437_vm5, %v250_v4, %v501_v15  ;;  %872 = vst [vmem:[#allocation8 + $0x38] sm:$0xff] %v978_v16  ;;  %v626_v28 = vmul.f32 1.4142135, %v562_v23  ;;  %vm438_vm7 = vcmp.ge.f32.partialorder %v252_v19, 0.0 }
 0x137   :  { %v629_v29 = vmul.f32 1.4142135, %v565_v24  ;;  %v563_v30 = vsel %vm435_vm6, %v359_v9, %v499_v18  ;;  %v261_v31 = vpop.f32.mrb[15].mxu0  ;;  %v502_v36 = vmul.f32 0.2, %v252_v19  ;;  %vm436_vm8 = vcmp.ge.f32.partialorder %v361_v25, 0.0 }
 0x138   :  { %v627_v32 = vmul.f32 1.4142135, %v563_v30  ;;  %v363_v38 = vadd.f32 %v362_v5, %v1218_v35  ;;  %v372_v39 = vpop.f32.mrb[14].mxu1  ;;  %v979_v40 = vpack.c.bf16 %v626_v28, %v625_v22  ;;  %v500_v41 = vmul.f32 0.2, %v361_v25 }
 0x139   :  { %v365_v42 = vadd.f32 %v364_v10, %v1220_v37  ;;  %v256_v43 = vadd.f32 %v255_v11, %v1214_v33  ;;  %v1248_v44 = vpop.f32.mrb[15].mxu1  ;;  %v566_v45 = vsel %vm438_vm7, %v252_v19, %v502_v36  ;;  %v258_v47 = vadd.f32 %v257_v20, %v1216_v34 }
 0x13a   :  { %vm439_vm9 = vcmp.ge.f32.partialorder %v363_v38, 0.0  ;;  %v503_v46 = vmul.f32 0.2, %v363_v38  ;;  %v1251_v48 = vpop.f32.mrb[16].mxu0  ;;  %873 = vst [vmem:[#allocation8 + $0x40] sm:$0xff] %v979_v40  ;;  %v564_v50 = vsel %vm436_vm8, %v361_v25, %v500_v41  ;;  %v1255_v60 = vpop.f32.mrb[16].mxu1  ;;  %v260_v4 = vadd.f32 %v259_v26, %v1214_v33 }
 0x13b   :  { %v630_v49 = vmul.f32 1.4142135, %v566_v45  ;;  %vm440_vm10 = vcmp.ge.f32.partialorder %v365_v42, 0.0  ;;  %v504_v51 = vmul.f32 0.2, %v365_v42  ;;  %v267_v52 = vpop.f32.mrb[17].mxu0  ;;  %v369_v5 = vadd.f32 %v368_v21, %v1218_v35 }
 0x13c   :  { %v628_v53 = vmul.f32 1.4142135, %v564_v50  ;;  %v567_v54 = vsel %vm439_vm9, %v363_v38, %v503_v46  ;;  %vm441_vm11 = vcmp.ge.f32.partialorder %v256_v43, 0.0  ;;  %v505_v55 = vmul.f32 0.2, %v256_v43  ;;  %v1253_v56 = vpop.f32.mrb[18].mxu0 }
 0x13d   :  { %v981_v57 = vpack.c.bf16 %v630_v49, %v629_v29  ;;  %v631_v58 = vmul.f32 1.4142135, %v567_v54  ;;  %v568_v59 = vsel %vm440_vm10, %v365_v42, %v504_v51  ;;  %vm442_vm12 = vcmp.ge.f32.partialorder %v258_v47, 0.0  ;;  %v1257_v61 = vpop.f32.mrb[19].mxu0  ;;  %v1259_v2 = vpop.f32.mrb[17].mxu1 }
 0x13e   :  { %v980_v62 = vpack.c.bf16 %v628_v53, %v627_v32  ;;  %v632_v63 = vmul.f32 1.4142135, %v568_v59  ;;  %v569_v0 = vsel %vm441_vm11, %v256_v43, %v505_v55  ;;  %v506_v1 = vmul.f32 0.2, %v258_v47  ;;  %v1264_v7 = vpop.f32.mrb[18].mxu1 }
 0x13f   :  { %875 = vst [vmem:[#allocation8 + $0x50] sm:$0xff] %v981_v57  ;;  %v633_v3 = vmul.f32 1.4142135, %v569_v0  ;;  %v262_v6 = vadd.f32 %v261_v31, %v1216_v34  ;;  %v371_v10 = vadd.f32 %v370_v27, %v1220_v37  ;;  %v373_v11 = vadd.f32 %v372_v39, %v1218_v35  ;;  %v1269_v12 = vpop.f32.mrb[19].mxu1 }
 0x140   :  { %874 = vst [vmem:[#allocation8 + $0x48] sm:$0xff] %v980_v62  ;;  %v982_v8 = vpack.c.bf16 %v632_v63, %v631_v58  ;;  %v570_v9 = vsel %vm442_vm12, %v258_v47, %v506_v1  ;;  %vm445_vm13 = vcmp.ge.f32.partialorder %v260_v4, 0.0  ;;  %v509_v14 = vmul.f32 0.2, %v260_v4 }
 0x141   :  { %v634_v13 = vmul.f32 1.4142135, %v570_v9  ;;  %vm443_vm14 = vcmp.ge.f32.partialorder %v369_v5, 0.0  ;;  %v507_v15 = vmul.f32 0.2, %v369_v5  ;;  %vm446_vm15 = vcmp.ge.f32.partialorder %v262_v6, 0.0 }
 0x142   :  { %876 = vst [vmem:[#allocation8 + $0x58] sm:$0xff] %v982_v8  ;;  %v510_v16 = vmul.f32 0.2, %v262_v6  ;;  %vm444_vm0 = vcmp.ge.f32.partialorder %v371_v10, 0.0  ;;  %v573_v18 = vsel %vm445_vm13, %v260_v4, %v509_v14  ;;  %v508_v19 = vmul.f32 0.2, %v371_v10 }
 0x143   :  { %v983_v17 = vpack.c.bf16 %v634_v13, %v633_v3  ;;  %vm447_vm1 = vcmp.ge.f32.partialorder %v373_v11, 0.0  ;;  %v1271_v20 = vpop.f32.mrb[20].mxu0  ;;  %v637_v21 = vmul.f32 1.4142135, %v573_v18  ;;  %v571_v22 = vsel %vm443_vm14, %v369_v5, %v507_v15  ;;  %v1275_v26 = vpop.f32.mrb[20].mxu1 }
 0x144   :  { %v574_v23 = vsel %vm446_vm15, %v262_v6, %v510_v16  ;;  %v511_v24 = vmul.f32 0.2, %v373_v11  ;;  %v1273_v25 = vpop.f32.mrb[21].mxu0  ;;  %v635_v27 = vmul.f32 1.4142135, %v571_v22  ;;  %v572_v29 = vsel %vm444_vm0, %v371_v10, %v508_v19  ;;  %v1281_v32 = vpop.f32.mrb[21].mxu1 }
 0x145   :  { %877 = vst [vmem:[#allocation8 + $0x60] sm:$0xff] %v983_v17  ;;  %v638_v28 = vmul.f32 1.4142135, %v574_v23  ;;  %v375_v30 = vadd.f32 %v1248_v44, %v1220_v37  ;;  %v1279_v31 = vpop.f32.mrb[22].mxu0  ;;  %v636_v36 = vmul.f32 1.4142135, %v572_v29  ;;  %v266_v39 = vadd.f32 %v1251_v48, %v1214_v33 }
 0x146   :  { %v575_v38 = vsel %vm447_vm1, %v373_v11, %v511_v24  ;;  %v268_v40 = vadd.f32 %v267_v52, %v1216_v34  ;;  %v1287_v41 = vpop.f32.mrb[23].mxu0  ;;  %v1289_v42 = vpop.f32.mrb[22].mxu1  ;;  %v270_v48 = vadd.f32 %v1253_v56, %v1214_v33  ;;  %v379_v52 = vadd.f32 %v1255_v60, %v1218_v35 }
 0x147   :  { %v985_v43 = vpack.c.bf16 %v638_v28, %v637_v21  ;;  %v639_v45 = vmul.f32 1.4142135, %v575_v38  ;;  %vm448_vm2 = vcmp.ge.f32.partialorder %v375_v30, 0.0  ;;  %v512_v44 = vmul.f32 0.2, %v375_v30  ;;  %v1291_v46 = vpop.f32.mrb[23].mxu1 }
 0x148   :  { %v984_v47 = vpack.c.bf16 %v636_v36, %v635_v27  ;;  %vm449_vm3 = vcmp.ge.f32.partialorder %v266_v39, 0.0  ;;  %v513_v49 = vmul.f32 0.2, %v266_v39  ;;  %vm450_vm4 = vcmp.ge.f32.partialorder %v268_v40, 0.0 }
 0x149   :  { %879 = vst [vmem:[#allocation8 + $0x70] sm:$0xff] %v985_v43  ;;  %v576_v50 = vsel %vm448_vm2, %v375_v30, %v512_v44  ;;  %v514_v51 = vmul.f32 0.2, %v268_v40  ;;  %v272_v55 = vadd.f32 %v1257_v61, %v1216_v34  ;;  %v381_v57 = vadd.f32 %v1259_v2, %v1220_v37 }
 0x14a   :  { %878 = vst [vmem:[#allocation8 + $0x68] sm:$0xff] %v984_v47  ;;  %v640_v53 = vmul.f32 1.4142135, %v576_v50  ;;  %v577_v54 = vsel %vm449_vm3, %v266_v39, %v513_v49  ;;  %v1301_v58 = vpop.f32.mrb[24].mxu0  ;;  %vm453_vm5 = vcmp.ge.f32.partialorder %v270_v48, 0.0  ;;  %vm451_vm6 = vcmp.ge.f32.partialorder %v379_v52, 0.0 }
 0x14b   :  { %v641_v59 = vmul.f32 1.4142135, %v577_v54  ;;  %v578_v62 = vsel %vm450_vm4, %v268_v40, %v514_v51  ;;  %v517_v63 = vmul.f32 0.2, %v270_v48  ;;  %v1303_v0 = vpop.f32.mrb[25].mxu0  ;;  %vm454_vm7 = vcmp.ge.f32.partialorder %v272_v55, 0.0 }
 0x14c   :  { %v986_v56 = vpack.c.bf16 %v640_v53, %v639_v45  ;;  %v642_v1 = vmul.f32 1.4142135, %v578_v62  ;;  %v515_v60 = vmul.f32 0.2, %v379_v52  ;;  %v1305_v3 = vpop.f32.mrb[26].mxu0  ;;  %vm452_vm8 = vcmp.ge.f32.partialorder %v381_v57, 0.0 }
 0x14d   :  { %v581_v4 = vsel %vm453_vm5, %v270_v48, %v517_v63  ;;  %v518_v61 = vmul.f32 0.2, %v272_v55  ;;  %v1307_v5 = vpop.f32.mrb[24].mxu1  ;;  %v1309_v2 = vpop.f32.mrb[27].mxu0  ;;  %v516_v10 = vmul.f32 0.2, %v381_v57  ;;  %v383_v15 = vadd.f32 %v1264_v7, %v1218_v35 }
 0x14e   :  { %880 = vst [vmem:[#allocation8 + $0x78] sm:$0xff] %v986_v56  ;;  %v987_v6 = vpack.c.bf16 %v642_v1, %v641_v59  ;;  %v645_v8 = vmul.f32 1.4142135, %v581_v4  ;;  %v579_v9 = vsel %vm451_vm6, %v379_v52, %v515_v60  ;;  %v1311_v11 = vpop.f32.mrb[25].mxu1  ;;  %v385_v16 = vadd.f32 %v1269_v12, %v1220_v37 }
 0x14f   :  { %v643_v13 = vmul.f32 1.4142135, %v579_v9  ;;  %v582_v14 = vsel %vm454_vm7, %v272_v55, %v518_v61  ;;  %v1317_v17 = vpop.f32.mrb[26].mxu1  ;;  %v580_v19 = vsel %vm452_vm8, %v381_v57, %v516_v10  ;;  %v276_v21 = vadd.f32 %v1271_v20, %v1214_v33 }
 0x150   :  { %881 = vst [vmem:[#allocation8 + $0x80] sm:$0xff] %v987_v6  ;;  %v646_v18 = vmul.f32 1.4142135, %v582_v14  ;;  %v278_v22 = vadd.f32 %v1273_v25, %v1216_v34  ;;  %v1324_v23 = vpop.f32.mrb[27].mxu1  ;;  %v644_v24 = vmul.f32 1.4142135, %v580_v19  ;;  %v280_v43 = vadd.f32 %v1279_v31, %v1214_v33 }
 0x151   :  { %vm455_vm9 = vcmp.ge.f32.partialorder %v383_v15, 0.0  ;;  %v519_v7 = vmul.f32 0.2, %v383_v15  ;;  %vm456_vm10 = vcmp.ge.f32.partialorder %v385_v16, 0.0  ;;  %v520_v12 = vmul.f32 0.2, %v385_v16 }
 0x152   :  { %v989_v27 = vpack.c.bf16 %v646_v18, %v645_v8  ;;  %vm457_vm11 = vcmp.ge.f32.partialorder %v276_v21, 0.0  ;;  %v521_v28 = vmul.f32 0.2, %v276_v21  ;;  %v1326_v29 = vpop.f32.mrb[28].mxu0  ;;  %v988_v30 = vpack.c.bf16 %v644_v24, %v643_v13  ;;  %v1334_v44 = vpop.f32.mrb[28].mxu1 }
 0x153   :  { %v583_v36 = vsel %vm455_vm9, %v383_v15, %v519_v7  ;;  %vm458_vm12 = vcmp.ge.f32.partialorder %v278_v22, 0.0  ;;  %v522_v38 = vmul.f32 0.2, %v278_v22  ;;  %v1328_v20 = vpop.f32.mrb[29].mxu0  ;;  %v584_v39 = vsel %vm456_vm10, %v385_v16, %v520_v12  ;;  %v1340_v52 = vpop.f32.mrb[29].mxu1 }
 0x154   :  { %883 = vst [vmem:[#allocation8 + $0x90] sm:$0xff] %v989_v27  ;;  %v647_v25 = vmul.f32 1.4142135, %v583_v36  ;;  %v585_v40 = vsel %vm457_vm11, %v276_v21, %v521_v28  ;;  %v1332_v45 = vpop.f32.mrb[30].mxu0  ;;  %882 = vst [vmem:[#allocation8 + $0x88] sm:$0xff] %v988_v30  ;;  %v389_v51 = vadd.f32 %v1275_v26, %v1218_v35  ;;  %vm461_vm13 = vcmp.ge.f32.partialorder %v280_v43, 0.0 }
 0x155   :  { %v648_v47 = vmul.f32 1.4142135, %v584_v39  ;;  %v649_v49 = vmul.f32 1.4142135, %v585_v40  ;;  %v586_v50 = vsel %vm458_vm12, %v278_v22, %v522_v38  ;;  %v1338_v48 = vpop.f32.mrb[31].mxu0  ;;  %v282_v31 = vadd.f32 %v1287_v41, %v1216_v34  ;;  %v1344_v55 = vpop.f32.mrb[30].mxu1 }
 0x156   :  { %v650_v53 = vmul.f32 1.4142135, %v586_v50  ;;  %v525_v54 = vmul.f32 0.2, %v280_v43  ;;  %vm459_vm14 = vcmp.ge.f32.partialorder %v389_v51, 0.0  ;;  %v391_v62 = vadd.f32 %v1281_v32, %v1220_v37  ;;  %v1348_v63 = vpop.f32.mrb[31].mxu1 }
 0x157   :  { %v990_v57 = vpack.c.bf16 %v648_v47, %v647_v25  ;;  %v523_v59 = vmul.f32 0.2, %v389_v51  ;;  %vm462_vm15 = vcmp.ge.f32.partialorder %v282_v31, 0.0  ;;  %v526_v1 = vmul.f32 0.2, %v282_v31 }
 0x158   :  { %v991_v26 = vpack.c.bf16 %v650_v53, %v649_v49  ;;  %v589_v56 = vsel %vm461_vm13, %v280_v43, %v525_v54  ;;  %vm460_vm0 = vcmp.ge.f32.partialorder %v391_v62, 0.0  ;;  %v524_v61 = vmul.f32 0.2, %v391_v62 }
 0x159   :  { %884 = vst [vmem:[#allocation8 + $0x98] sm:$0xff] %v990_v57  ;;  %v653_v60 = vmul.f32 1.4142135, %v589_v56  ;;  %v587_v4 = vsel %vm459_vm14, %v389_v51, %v523_v59  ;;  %v590_v6 = vsel %vm462_vm15, %v282_v31, %v526_v1  ;;  %v393_v8 = vadd.f32 %v1289_v42, %v1218_v35 }
 0x15a   :  { %885 = vst [vmem:[#allocation8 + $0xa0] sm:$0xff] %v991_v26  ;;  %v651_v41 = vmul.f32 1.4142135, %v587_v4  ;;  %v395_v32 = vadd.f32 %v1291_v46, %v1220_v37  ;;  %v654_v9 = vmul.f32 1.4142135, %v590_v6  ;;  %v588_v10 = vsel %vm460_vm0, %v391_v62, %v524_v61 }
 0x15b   :  { %v286_v13 = vadd.f32 %v1301_v58, %v1214_v33  ;;  %v288_v14 = vadd.f32 %v1303_v0, %v1216_v34  ;;  %v652_v15 = vmul.f32 1.4142135, %v588_v10  ;;  %vm463_vm1 = vcmp.ge.f32.partialorder %v393_v8, 0.0 }
 0x15c   :  { %v527_v16 = vmul.f32 0.2, %v393_v8  ;;  %vm464_vm2 = vcmp.ge.f32.partialorder %v395_v32, 0.0  ;;  %v993_v18 = vpack.c.bf16 %v654_v9, %v653_v60  ;;  %v528_v19 = vmul.f32 0.2, %v395_v32 }
 0x15d   :  { %vm465_vm3 = vcmp.ge.f32.partialorder %v286_v13, 0.0  ;;  %v529_v21 = vmul.f32 0.2, %v286_v13  ;;  %v992_v42 = vpack.c.bf16 %v652_v15, %v651_v41  ;;  %vm466_vm4 = vcmp.ge.f32.partialorder %v288_v14, 0.0 }
 0x15e   :  { %v591_v22 = vsel %vm463_vm1, %v393_v8, %v527_v16  ;;  %v530_v46 = vmul.f32 0.2, %v288_v14  ;;  %887 = vst [vmem:[#allocation8 + $0xb0] sm:$0xff] %v993_v18  ;;  %v592_v7 = vsel %vm464_vm2, %v395_v32, %v528_v19  ;;  %v290_v58 = vadd.f32 %v1305_v3, %v1214_v33 }
 0x15f   :  { %v655_v24 = vmul.f32 1.4142135, %v591_v22  ;;  %v593_v27 = vsel %vm465_vm3, %v286_v13, %v529_v21  ;;  %886 = vst [vmem:[#allocation8 + $0xa8] sm:$0xff] %v992_v42  ;;  %v656_v0 = vmul.f32 1.4142135, %v592_v7  ;;  %v399_v30 = vadd.f32 %v1307_v5, %v1218_v35 }
 0x160   :  { %v657_v12 = vmul.f32 1.4142135, %v593_v27  ;;  %v594_v28 = vsel %vm466_vm4, %v288_v14, %v530_v46  ;;  %vm469_vm5 = vcmp.ge.f32.partialorder %v290_v58, 0.0  ;;  %v533_v38 = vmul.f32 0.2, %v290_v58 }
 0x161   :  { %v658_v36 = vmul.f32 1.4142135, %v594_v28  ;;  %v292_v25 = vadd.f32 %v1309_v2, %v1216_v34  ;;  %v994_v39 = vpack.c.bf16 %v656_v0, %v655_v24  ;;  %vm467_vm6 = vcmp.ge.f32.partialorder %v399_v30, 0.0 }
 0x162   :  { %v531_v40 = vmul.f32 0.2, %v399_v30  ;;  %v401_v43 = vadd.f32 %v1311_v11, %v1220_v37  ;;  %v597_v47 = vsel %vm469_vm5, %v290_v58, %v533_v38  ;;  %v403_v2 = vadd.f32 %v1317_v17, %v1218_v35 }
 0x163   :  { %v995_v3 = vpack.c.bf16 %v658_v36, %v657_v12  ;;  %vm470_vm7 = vcmp.ge.f32.partialorder %v292_v25, 0.0  ;;  %v534_v49 = vmul.f32 0.2, %v292_v25  ;;  %888 = vst [vmem:[#allocation8 + $0xb8] sm:$0xff] %v994_v39  ;;  %v661_v50 = vmul.f32 1.4142135, %v597_v47 }
 0x164   :  { %v595_v51 = vsel %vm467_vm6, %v399_v30, %v531_v40  ;;  %vm468_vm8 = vcmp.ge.f32.partialorder %v401_v43, 0.0  ;;  %v532_v5 = vmul.f32 0.2, %v401_v43  ;;  %v405_v31 = vadd.f32 %v1324_v23, %v1220_v37 }
 0x165   :  { %889 = vst [vmem:[#allocation8 + $0xc0] sm:$0xff] %v995_v3  ;;  %v659_v53 = vmul.f32 1.4142135, %v595_v51  ;;  %v598_v54 = vsel %vm470_vm7, %v292_v25, %v534_v49  ;;  %v296_v59 = vadd.f32 %v1326_v29, %v1214_v33  ;;  %v298_v62 = vadd.f32 %v1328_v20, %v1216_v34 }
 0x166   :  { %v662_v57 = vmul.f32 1.4142135, %v598_v54  ;;  %v596_v11 = vsel %vm468_vm8, %v401_v43, %v532_v5  ;;  %vm471_vm9 = vcmp.ge.f32.partialorder %v403_v2, 0.0  ;;  %v535_v56 = vmul.f32 0.2, %v403_v2 }
 0x167   :  { %v660_v26 = vmul.f32 1.4142135, %v596_v11  ;;  %vm472_vm10 = vcmp.ge.f32.partialorder %v405_v31, 0.0  ;;  %v536_v60 = vmul.f32 0.2, %v405_v31  ;;  %vm473_vm11 = vcmp.ge.f32.partialorder %v296_v59, 0.0 }
 0x168   :  { %v997_v1 = vpack.c.bf16 %v662_v57, %v661_v50  ;;  %v537_v4 = vmul.f32 0.2, %v296_v59  ;;  %v599_v61 = vsel %vm471_vm9, %v403_v2, %v535_v56  ;;  %vm474_vm12 = vcmp.ge.f32.partialorder %v298_v62, 0.0 }
 0x169   :  { %v996_v17 = vpack.c.bf16 %v660_v26, %v659_v53  ;;  %v538_v23 = vmul.f32 0.2, %v298_v62  ;;  %v663_v41 = vmul.f32 1.4142135, %v599_v61  ;;  %v600_v6 = vsel %vm472_vm10, %v405_v31, %v536_v60 }
 0x16a   :  { %891 = vst [vmem:[#allocation8 + $0xd0] sm:$0xff] %v997_v1  ;;  %v601_v8 = vsel %vm473_vm11, %v296_v59, %v537_v4  ;;  %v300_v29 = vadd.f32 %v1332_v45, %v1214_v33  ;;  %v664_v20 = vmul.f32 1.4142135, %v600_v6  ;;  %v409_v10 = vadd.f32 %v1334_v44, %v1218_v35 }
 0x16b   :  { %890 = vst [vmem:[#allocation8 + $0xc8] sm:$0xff] %v996_v17  ;;  %v665_v32 = vmul.f32 1.4142135, %v601_v8  ;;  %v602_v9 = vsel %vm474_vm12, %v298_v62, %v538_v23  ;;  %v302_v15 = vadd.f32 %v1338_v48, %v1216_v34  ;;  %v411_v19 = vadd.f32 %v1340_v52, %v1220_v37 }
 0x16c   :  { %v666_v13 = vmul.f32 1.4142135, %v602_v9  ;;  %vm477_vm13 = vcmp.ge.f32.partialorder %v300_v29, 0.0  ;;  %v541_v14 = vmul.f32 0.2, %v300_v29  ;;  %v998_v16 = vpack.c.bf16 %v664_v20, %v663_v41 }
 0x16d   :  { %vm475_vm14 = vcmp.ge.f32.partialorder %v409_v10, 0.0  ;;  %v539_v18 = vmul.f32 0.2, %v409_v10  ;;  %vm478_vm15 = vcmp.ge.f32.partialorder %v302_v15, 0.0  ;;  %v542_v21 = vmul.f32 0.2, %v302_v15 }
 0x16e   :  { %v999_v33 = vpack.c.bf16 %v666_v13, %v665_v32  ;;  %v605_v45 = vsel %vm477_vm13, %v300_v29, %v541_v14  ;;  %892 = vst [vmem:[#allocation8 + $0xd8] sm:$0xff] %v998_v16  ;;  %vm476_vm0 = vcmp.ge.f32.partialorder %v411_v19, 0.0  ;;  %v540_v44 = vmul.f32 0.2, %v411_v19 }
 0x16f   :  { %v669_v42 = vmul.f32 1.4142135, %v605_v45  ;;  %v603_v22 = vsel %vm475_vm14, %v409_v10, %v539_v18  ;;  %v606_v24 = vsel %vm478_vm15, %v302_v15, %v542_v21  ;;  %v413_v34 = vadd.f32 %v1344_v55, %v1218_v35 }
 0x170   :  { %893 = vst [vmem:[#allocation8 + $0xe0] sm:$0xff] %v999_v33  ;;  %v667_v46 = vmul.f32 1.4142135, %v603_v22  ;;  %v415_v48 = vadd.f32 %v1348_v63, %v1220_v37  ;;  %v670_v7 = vmul.f32 1.4142135, %v606_v24  ;;  %v604_v52 = vsel %vm476_vm0, %v411_v19, %v540_v44 }
 0x171   :  { %v668_v27 = vmul.f32 1.4142135, %v604_v52  ;;  %vm479_vm1 = vcmp.ge.f32.partialorder %v413_v34, 0.0  ;;  %v543_v58 = vmul.f32 0.2, %v413_v34 }
 0x172   :  { %vm480_vm2 = vcmp.ge.f32.partialorder %v415_v48, 0.0  ;;  %v1001_v0 = vpack.c.bf16 %v670_v7, %v669_v42  ;;  %v544_v12 = vmul.f32 0.2, %v415_v48 }
 0x173   :  { %v1000_v28 = vpack.c.bf16 %v668_v27, %v667_v46  ;;  %v607_v30 = vsel %vm479_vm1, %v413_v34, %v543_v58 }
 0x174   :  { %895 = vst [vmem:[#allocation8 + $0xf0] sm:$0xff] %v1001_v0  ;;  %v671_v36 = vmul.f32 1.4142135, %v607_v30  ;;  %v608_v38 = vsel %vm480_vm2, %v415_v48, %v544_v12 }
 0x175   :  { %894 = vst [vmem:[#allocation8 + $0xe8] sm:$0xff] %v1000_v28  ;;  %v672_v35 = vmul.f32 1.4142135, %v608_v38 }
 0x177   :  { %v1002_v55 = vpack.c.bf16 %v672_v35, %v671_v36 }
 0x179   :  { %896 = vst [vmem:[#allocation8 + $0xf8] sm:$0xff] %v1002_v55 }
 0x17a   :  { %1100 = shalt.err (!%p1097_p0)
}
 0x17b   :  { %s1101_s25 = scalar_lea.hbm %s1401_s3, 4096 }
 0x17c   :  { %p1102_p1 = scmp.ne.s32.totalorder %s1401_s3, %s1101_s25  ;;  %p1105_p2 = scmp.lt.u32.totalorder %s1101_s25, %s1401_s3 }
 0x17e   :  { %p1107_p3 = pnand %p1105_p2, %p1102_p1 }
 0x180   :  { %1110 = shalt.err (!%p1107_p3)
}
 0x181   :  { %s1126_s30 = smov 256   ;;  %s1127_s4 = smov 16  }
 0x182   :  { %908 = dma.vmem_to_hbm [thread:$0]  %s903_s21, 4096, %s1401_s3, [#allocation4], %s1126_s30, %s1126_s30, %s1127_s4  }
 0x183   :  { %1115 = dma.done.wait [#allocation4], 4096  }
 0x184   :  { %1116 = vsyncadd [#allocation4], 4294963200 }
 0x185   :  { %912 = vsyncpa [#allocation3], 1 }
 0x186   :  { %913 = vsyncpa [#allocation6], 1 }
 0x187   :  { %914 = vsyncpa [#allocation4], 1 }

</bundles_post_ra>
